<compile_context>
chip_gen: v5e
topology: v5e:2x2
jax: 0.10.0
libtpu: 0.0.40
codegen_flags: <defaults>
</compile_context>

<pallas_src>
import jax
import jax.numpy as jnp
from jax.experimental import pallas as pl
from jax.experimental.pallas import tpu as pltpu

LANE = 128
SUBLANE = 8


# ----------------------------- Pallas kernel ------------------------------ #

def diffusion_kernel(a_ref, x_ref, wg_ref, bg_ref, wq_ref, bq_ref,
                     wfb_ref, bf_ref, out_ref):
    """One chunk of G graphs per grid step.

    a_ref  : [G*N, G*N] block-diagonal normalized adjacency for the chunk
    x_ref  : [G*N, N]   stacked node features
    wfb_ref: [G, G*N]   kron(I_G, WF) -> per-graph node reduction as a matmul
    out_ref: [G, E_pad] per-graph edge scores (lane padded)
    """
    # GCN linear: x @ Wg^T  (wg_ref already transposed: [N_in, N_out])
    xw = jnp.dot(x_ref[...], wg_ref[...], preferred_element_type=jnp.float32)
    # message passing + bias + tanh: A_hat @ (x Wg^T) + bg   (block-diag batch)
    h1 = jnp.tanh(
        jnp.dot(a_ref[...], xw, preferred_element_type=jnp.float32) + bg_ref[...]
    )
    # Wq: H1 @ Wq^T + bq, tanh  -> [G*N, E_pad] (lane-dense)
    h2 = jnp.tanh(
        jnp.dot(h1, wq_ref[...], preferred_element_type=jnp.float32) + bq_ref[...]
    )
    # WF: F_hat[g, e] = sum_n WF[n] * H2[g*N + n, e] + bF  (single MXU op)
    out_ref[...] = (
        jnp.dot(wfb_ref[...], h2, preferred_element_type=jnp.float32) + bf_ref[...]
    )


def diffusion_forward(a_hat, x, wg, bg, wq, bq, wf, bf):
    """Batched forward: a_hat, x are [B, N, N]; weights shared across graphs."""
    b, n, _ = a_hat.shape
    e = wq.shape[0]
    e_pad = pl.cdiv(e, LANE) * LANE

    # Graphs per chunk: fill ~128 MXU rows per chunk; keep G*N a multiple of 8.
    g = max(1, min(b, LANE // n)) if n <= LANE else 1
    while (g * n) % SUBLANE != 0 and g < b:
        g += 1
    num_chunks = pl.cdiv(b, g)
    b_pad = num_chunks * g
    gn = g * n

    # Pad the batch with zero graphs (results sliced off below).
    if b_pad != b:
        pad = ((0, b_pad - b), (0, 0), (0, 0))
        a_hat = jnp.pad(a_hat, pad)
        x = jnp.pad(x, pad)

    # Per-chunk block-diagonal adjacency: [C, G*N, G*N].
    eye_g = jnp.eye(g, dtype=jnp.float32)
    a_chunks = a_hat.reshape(num_chunks, g, n, n)
    a_blk = jnp.einsum('gh,cgij->cgihj', eye_g, a_chunks).reshape(num_chunks, gn, gn)
    x_chunks = x.reshape(num_chunks, gn, n)

    # Kernel-friendly weight layouts; padding only touches the lane (E) axis.
    wg_t = wg.T                                                      # [N, N]
    bg_row = bg.reshape(1, n)                                        # [1, N]
    wq_t = jnp.zeros((n, e_pad), jnp.float32).at[:, :e].set(wq.T)    # [N, E_pad]
    bq_row = jnp.zeros((1, e_pad), jnp.float32).at[:, :e].set(bq.reshape(1, e))
    wf_blk = jnp.kron(eye_g, wf.reshape(1, n))                       # [G, G*N]
    bf_sc = bf.reshape(1, 1)                                         # [1, 1]

    def shared(shape):
        # weight/bias block: same block every grid step -> DMA'd once, resident
        return pl.BlockSpec(shape, lambda c, _r=len(shape): (0,) * _r)

    out = pl.pallas_call(
        diffusion_kernel,
        out_shape=jax.ShapeDtypeStruct((num_chunks, g, e_pad), jnp.float32),
        grid=(num_chunks,),
        in_specs=[
            pl.BlockSpec((None, gn, gn), lambda c: (c, 0, 0)),  # A block-diag
            pl.BlockSpec((None, gn, n), lambda c: (c, 0, 0)),   # X stacked
            shared((n, n)),        # Wg^T
            shared((1, n)),        # bg
            shared((n, e_pad)),    # Wq^T (lane padded)
            shared((1, e_pad)),    # bq   (lane padded)
            shared((g, gn)),       # kron(I_G, WF)
            shared((1, 1)),        # bF
        ],
        out_specs=pl.BlockSpec((None, g, e_pad), lambda c: (c, 0, 0)),
        compiler_params=pltpu.CompilerParams(
            dimension_semantics=("parallel",),  # chunks shard across TCs (v7x)
        ),
    )(a_blk, x_chunks, wg_t, bg_row, wq_t, bq_row, wf_blk, bf_sc)

    return out.reshape(b_pad, e_pad)[:b, :e]  # [B, E]


# ------------------------------- JAX glue ---------------------------------- #

def gcn_normalized_adjacency(edge_index, edge_weight, num_nodes):
    """Dense A_hat = D^{-1/2} (A + I) D^{-1/2}, matching PyG gcn_norm.

    edge_index[0] = source j, edge_index[1] = target i; messages x_j flow to i.
    """
    row = jnp.concatenate([edge_index[0], jnp.arange(num_nodes)])
    col = jnp.concatenate([edge_index[1], jnp.arange(num_nodes)])
    ew = jnp.concatenate([edge_weight, jnp.ones((num_nodes,), jnp.float32)])
    deg = jnp.zeros((num_nodes,), jnp.float32).at[col].add(ew)
    dinv = jnp.where(deg > 0, jax.lax.rsqrt(deg), 0.0)
    norm = dinv[row] * ew * dinv[col]
    # A_hat[i, j] accumulates normalized weight of edge j -> i
    a_hat = jnp.zeros((num_nodes, num_nodes), jnp.float32).at[col, row].add(norm)
    return a_hat


def init_params(num_nodes, num_edges, key):
    k1, k2, k3, k4, k5, k6 = jax.random.split(key, 6)
    scale = 0.1
    wg = scale * jax.random.normal(k1, (num_nodes, num_nodes), jnp.float32)  # GCN lin
    bg = scale * jax.random.normal(k2, (num_nodes,), jnp.float32)
    wq = scale * jax.random.normal(k3, (num_edges, num_nodes), jnp.float32)  # Wq
    bq = scale * jax.random.normal(k4, (num_edges,), jnp.float32)
    wf = scale * jax.random.normal(k5, (1, num_nodes), jnp.float32)          # WF
    bf = scale * jax.random.normal(k6, (1,), jnp.float32)
    return wg, bg, wq, bq, wf, bf


def reference_forward(a_hat, x, wg, bg, wq, bq, wf, bf):
    h1 = jnp.tanh(a_hat @ (x @ wg.T) + bg[None, :])
    h2 = jnp.tanh(h1 @ wq.T + bq[None, :])
    return (h2.T @ wf.T + bf).squeeze(-1)


# --------------------------------- main ------------------------------------ #

if __name__ == "__main__":
    num_nodes = 16   # N: graph nodes == feature dim (per module definition)
    num_edges = 32   # E
    batch = 8        # independent graphs; packed into chunks of G graphs

    key = jax.random.PRNGKey(0)
    kp, kd = jax.random.split(key)
    wg, bg, wq, bq, wf, bf = init_params(num_nodes, num_edges, kp)

    xs, a_hats = [], []
    for gk in jax.random.split(kd, batch):
        kx, ke, kw = jax.random.split(gk, 3)
        x = jax.random.normal(kx, (num_nodes, num_nodes), jnp.float32)
        edge_index = jax.random.randint(ke, (2, num_edges), 0, num_nodes, jnp.int32)
        edge_weight = jax.random.uniform(kw, (num_edges,), jnp.float32, 0.1, 1.0)
        xs.append(x)
        a_hats.append(gcn_normalized_adjacency(edge_index, edge_weight, num_nodes))
    x_b = jnp.stack(xs)       # [B, N, N]
    a_b = jnp.stack(a_hats)   # [B, N, N]

    f_hat = diffusion_forward(a_b, x_b, wg, bg, wq, bq, wf, bf)
    f_hat = jax.block_until_ready(f_hat)

    f_ref = jnp.stack([
        reference_forward(a_b[i], x_b[i], wg, bg, wq, bq, wf, bf)
        for i in range(batch)
    ])
    assert f_hat.shape == (batch, num_edges)
    assert jnp.allclose(f_hat, f_ref, atol=1e-5, rtol=1e-5)

    print("KERNEL_OK")
</pallas_src>

<mosaic_0001>
module attributes {stable_mosaic.version = 11 : i64} {
  func.func @diffusion_kernel(%arg0: i32, %arg1: memref<1x128x128xf32, #tpu.memory_space<vmem>>, %arg2: memref<1x128x16xf32, #tpu.memory_space<vmem>>, %arg3: memref<16x16xf32, #tpu.memory_space<vmem>>, %arg4: memref<1x16xf32, #tpu.memory_space<vmem>>, %arg5: memref<16x128xf32, #tpu.memory_space<vmem>>, %arg6: memref<1x128xf32, #tpu.memory_space<vmem>>, %arg7: memref<8x128xf32, #tpu.memory_space<vmem>>, %arg8: memref<1x1xf32, #tpu.memory_space<vmem>>, %arg9: memref<1x8x128xf32, #tpu.memory_space<vmem>>) attributes {dimension_semantics = [#tpu.dimension_semantics<parallel>], iteration_bounds = array<i64: 1>, scalar_prefetch = 0 : i64, scratch_operands = 0 : i64, tpu.core_type = #tpu.core_type<tc>, window_params = [{transform_indices = @transform_0, window_bounds = array<i64: 1, 128, 128>}, {transform_indices = @transform_1, window_bounds = array<i64: 1, 128, 16>}, {pipeline_mode = #tpu.pipeline_mode<synchronous>, transform_indices = @transform_2, window_bounds = array<i64: 16, 16>}, {pipeline_mode = #tpu.pipeline_mode<synchronous>, transform_indices = @transform_3, window_bounds = array<i64: 1, 16>}, {pipeline_mode = #tpu.pipeline_mode<synchronous>, transform_indices = @transform_4, window_bounds = array<i64: 16, 128>}, {pipeline_mode = #tpu.pipeline_mode<synchronous>, transform_indices = @transform_5, window_bounds = array<i64: 1, 128>}, {pipeline_mode = #tpu.pipeline_mode<synchronous>, transform_indices = @transform_6, window_bounds = array<i64: 8, 128>}, {pipeline_mode = #tpu.pipeline_mode<synchronous>, transform_indices = @transform_7, window_bounds = array<i64: 1, 1>}, {transform_indices = @transform_8, window_bounds = array<i64: 1, 8, 128>}]} {
    %c0 = arith.constant 0 : index
    %c0_0 = arith.constant 0 : index
    %c0_1 = arith.constant 0 : index
    %0 = vector.load %arg2[%c0, %c0_0, %c0_1] : memref<1x128x16xf32, #tpu.memory_space<vmem>>, vector<1x128x16xf32>
    %1 = vector.shape_cast %0 : vector<1x128x16xf32> to vector<128x16xf32>
    %c0_2 = arith.constant 0 : index
    %c0_3 = arith.constant 0 : index
    %2 = vector.load %arg3[%c0_2, %c0_3] : memref<16x16xf32, #tpu.memory_space<vmem>>, vector<16x16xf32>
    %cst = arith.constant dense<0.000000e+00> : vector<128x16xf32>
    %3 = tpu.matmul %1, %2, %cst {dimension_numbers = #tpu.dot_dimension_numbers<[1], [0], [0], [1], [0, 0, 1, 1], [], []>} : vector<128x16xf32>, vector<16x16xf32>, vector<128x16xf32> -> vector<128x16xf32>
    %c0_4 = arith.constant 0 : index
    %c0_5 = arith.constant 0 : index
    %c0_6 = arith.constant 0 : index
    %4 = vector.load %arg1[%c0_4, %c0_5, %c0_6] : memref<1x128x128xf32, #tpu.memory_space<vmem>>, vector<1x128x128xf32>
    %5 = vector.shape_cast %4 : vector<1x128x128xf32> to vector<128x128xf32>
    %cst_7 = arith.constant dense<0.000000e+00> : vector<128x16xf32>
    %6 = tpu.matmul %5, %3, %cst_7 {dimension_numbers = #tpu.dot_dimension_numbers<[1], [0], [0], [1], [0, 0, 1, 1], [], []>} : vector<128x128xf32>, vector<128x16xf32>, vector<128x16xf32> -> vector<128x16xf32>
    %c0_8 = arith.constant 0 : index
    %c0_9 = arith.constant 0 : index
    %7 = vector.load %arg4[%c0_8, %c0_9] : memref<1x16xf32, #tpu.memory_space<vmem>>, vector<1x16xf32>
    %8 = vector.broadcast %7 : vector<1x16xf32> to vector<128x16xf32>
    %9 = arith.addf %6, %8 : vector<128x16xf32>
    %10 = math.tanh %9 : vector<128x16xf32>
    %c0_10 = arith.constant 0 : index
    %c0_11 = arith.constant 0 : index
    %11 = vector.load %arg5[%c0_10, %c0_11] : memref<16x128xf32, #tpu.memory_space<vmem>>, vector<16x128xf32>
    %cst_12 = arith.constant dense<0.000000e+00> : vector<128x128xf32>
    %12 = tpu.matmul %10, %11, %cst_12 {dimension_numbers = #tpu.dot_dimension_numbers<[1], [0], [0], [1], [0, 0, 1, 1], [], []>} : vector<128x16xf32>, vector<16x128xf32>, vector<128x128xf32> -> vector<128x128xf32>
    %c0_13 = arith.constant 0 : index
    %c0_14 = arith.constant 0 : index
    %13 = vector.load %arg6[%c0_13, %c0_14] : memref<1x128xf32, #tpu.memory_space<vmem>>, vector<1x128xf32>
    %14 = vector.broadcast %13 : vector<1x128xf32> to vector<128x128xf32>
    %15 = arith.addf %12, %14 : vector<128x128xf32>
    %16 = math.tanh %15 : vector<128x128xf32>
    %c0_15 = arith.constant 0 : index
    %c0_16 = arith.constant 0 : index
    %17 = vector.load %arg7[%c0_15, %c0_16] : memref<8x128xf32, #tpu.memory_space<vmem>>, vector<8x128xf32>
    %cst_17 = arith.constant dense<0.000000e+00> : vector<8x128xf32>
    %18 = tpu.matmul %17, %16, %cst_17 {dimension_numbers = #tpu.dot_dimension_numbers<[1], [0], [0], [1], [0, 0, 1, 1], [], []>} : vector<8x128xf32>, vector<128x128xf32>, vector<8x128xf32> -> vector<8x128xf32>
    %c0_18 = arith.constant 0 : index
    %c0_19 = arith.constant 0 : index
    %19 = vector.load %arg8[%c0_18, %c0_19] : memref<1x1xf32, #tpu.memory_space<vmem>>, vector<1x1xf32>
    %20 = vector.broadcast %19 : vector<1x1xf32> to vector<8x128xf32>
    %21 = arith.addf %18, %20 : vector<8x128xf32>
    %c0_20 = arith.constant 0 : index
    %c0_21 = arith.constant 0 : index
    %c0_22 = arith.constant 0 : index
    %22 = vector.load %arg9[%c0_20, %c0_21, %c0_22] : memref<1x8x128xf32, #tpu.memory_space<vmem>>, vector<1x8x128xf32>
    %23 = vector.shape_cast %22 : vector<1x8x128xf32> to vector<8x128xf32>
    %24 = vector.shape_cast %21 : vector<8x128xf32> to vector<1x8x128xf32>
    tpu.vector_store %arg9[%c0_20, %c0_21, %c0_22], %24 {strides = array<i32>} : memref<1x8x128xf32, #tpu.memory_space<vmem>>, vector<1x8x128xf32>,
    return
  }
  func.func @transform_0(%arg0: i32) -> (i32, i32, i32) {
    %c0_i32 = arith.constant 0 : i32
    %c0_i32_0 = arith.constant 0 : i32
    %c0_i32_1 = arith.constant 0 : i32
    return %arg0, %c0_i32, %c0_i32_0 : i32, i32, i32
  }
  func.func @transform_1(%arg0: i32) -> (i32, i32, i32) {
    %c0_i32 = arith.constant 0 : i32
    %c0_i32_0 = arith.constant 0 : i32
    %c0_i32_1 = arith.constant 0 : i32
    return %arg0, %c0_i32, %c0_i32_0 : i32, i32, i32
  }
  func.func @transform_2(%arg0: i32) -> (i32, i32) {
    %c0_i32 = arith.constant 0 : i32
    %c0_i32_0 = arith.constant 0 : i32
    %c0_i32_1 = arith.constant 0 : i32
    return %c0_i32, %c0_i32_0 : i32, i32
  }
  func.func @transform_3(%arg0: i32) -> (i32, i32) {
    %c0_i32 = arith.constant 0 : i32
    %c0_i32_0 = arith.constant 0 : i32
    %c0_i32_1 = arith.constant 0 : i32
    return %c0_i32, %c0_i32_0 : i32, i32
  }
  func.func @transform_4(%arg0: i32) -> (i32, i32) {
    %c0_i32 = arith.constant 0 : i32
    %c0_i32_0 = arith.constant 0 : i32
    %c0_i32_1 = arith.constant 0 : i32
    return %c0_i32, %c0_i32_0 : i32, i32
  }
  func.func @transform_5(%arg0: i32) -> (i32, i32) {
    %c0_i32 = arith.constant 0 : i32
    %c0_i32_0 = arith.constant 0 : i32
    %c0_i32_1 = arith.constant 0 : i32
    return %c0_i32, %c0_i32_0 : i32, i32
  }
  func.func @transform_6(%arg0: i32) -> (i32, i32) {
    %c0_i32 = arith.constant 0 : i32
    %c0_i32_0 = arith.constant 0 : i32
    %c0_i32_1 = arith.constant 0 : i32
    return %c0_i32, %c0_i32_0 : i32, i32
  }
  func.func @transform_7(%arg0: i32) -> (i32, i32) {
    %c0_i32 = arith.constant 0 : i32
    %c0_i32_0 = arith.constant 0 : i32
    %c0_i32_1 = arith.constant 0 : i32
    return %c0_i32, %c0_i32_0 : i32, i32
  }
  func.func @transform_8(%arg0: i32) -> (i32, i32, i32) {
    %c0_i32 = arith.constant 0 : i32
    %c0_i32_0 = arith.constant 0 : i32
    %c0_i32_1 = arith.constant 0 : i32
    return %arg0, %c0_i32, %c0_i32_0 : i32, i32, i32
  }
}

</mosaic_0001>

<bundles_post_ra>
// kernel: tpu_custom_call.1
= control target key start
LH: loop header
LB: loop body
LE: loop exit
PB: predicated region body
PF: predicated region fallthrough
CT: control target
= control target key end

     0   :  { %s904_s0 = inlined_call_operand.vmem [shape: f32[1,128,128], index: 0, kind: input, shape index: {}]   ;;  %s905_s1 = inlined_call_operand.vmem [shape: f32[1,128,16], index: 1, kind: input, shape index: {}]   ;;  %s906_s2 = inlined_call_operand.vmem [shape: f32[16,16], index: 2, kind: input, shape index: {}]   ;;  %s907_s3 = inlined_call_operand.vmem [shape: f32[1,16], index: 3, kind: input, shape index: {}]   ;;  %s908_s4 = inlined_call_operand.hbm [shape: f32[16,128], index: 4, kind: input, shape index: {}]   ;;  %s909_s5 = inlined_call_operand.vmem [shape: f32[1,128], index: 5, kind: input, shape index: {}]   ;;  %s910_s6 = inlined_call_operand.hbm [shape: f32[8,128], index: 6, kind: input, shape index: {}]   ;;  %s911_s7 = inlined_call_operand.<no memory space> [shape: f32[1,1], index: 7, kind: input, shape index: {}]   ;;  %s912_s8 = inlined_call_operand.hbm [shape: f32[1,8,128], index: 8, kind: output, shape index: {}]  }
   0x1   :  { %v13_v0 = vstv %s911_s7 }
   0x2   :  { %14 = vst [vmem:[#allocation2] sm:$0x1] %v13_v0 }
   0x3   :  { %15 = vsyncpa [#allocation4], 0 }
   0x4   :  { %16 = vsyncpa [#allocation7], 0 }
   0x5   :  { %17 = vsyncpa [#allocation5], 0  ;;  %s30_s9 = sshll.u32 %s908_s4, 4  ;;  %s677_s10 = smov [#allocation3]   ;;  %s31_s9 = int_to_ptr.hbm [resolvable:$true] %s30_s9 }
   0x6   :  { %s32_s11 = sshll.u32 %s677_s10, 4  ;;  %s46_s14 = sshll.u32 %s910_s6, 4  ;;  %s33_s11 = int_to_ptr.vmem [resolvable:$true] %s32_s11  ;;  %s47_s14 = int_to_ptr.hbm [resolvable:$true] %s46_s14 }
   0x7   :  { %s678_s15 = smov 128   ;;  %s679_s16 = smov 8  }
   0x8   :  { %38 = dma.hbm_to_vmem [thread:$0]  %s31_s9, 256, %s33_s11, [#allocation4], %s678_s15, %s678_s15, %s679_s16  }
   0x9   :  { %s680_s7 = smov [#allocation6]  }
   0xa   :  { %s48_s17 = sshll.u32 %s680_s7, 4  ;;  %s49_s17 = int_to_ptr.vmem [resolvable:$true] %s48_s17 }
   0xb   :  { %51 = dma.hbm_to_vmem [thread:$0]  %s47_s14, 128, %s49_s17, [#allocation7]  }
   0xc   :  { %671 = dma.done.wait [#allocation4], 256  }
   0xd   :  { %672 = vsyncadd [#allocation4], 4294967040 }
   0xe   :  { %673 = dma.done.wait [#allocation7], 128  }
   0xf   :  { %674 = vsyncadd [#allocation7], 4294967168  ;;  %v79_v1 = vld [vmem:[%s906_s2 + $0x8] sm:$0xff]  ;;  %v78_v2 = vld [vmem:[%s906_s2] sm:$0xff]  ;;  %vm80_vm0 = vcmask 130048   ;;  %s466_s12 = sshll.u32 %s912_s8, 4  ;;  %s467_s12 = int_to_ptr.hbm [resolvable:$true] %s466_s12 }
  0x10   :  { %143 = vmatpush.msra.mxu0 %v79_v1  ;;  %v62_v3 = vld [vmem:[%s905_s1] sm:$0xff]  ;;  %v63_v4 = vld [vmem:[%s905_s1 + $0x8] sm:$0xff]  ;;  %v64_v5 = vld [vmem:[%s905_s1 + $0x10] sm:$0xff] }
  0x11   :  { %v65_v6 = vld [vmem:[%s905_s1 + $0x18] sm:$0xff]  ;;  %v66_v7 = vld [vmem:[%s905_s1 + $0x20] sm:$0xff]  ;;  %v67_v8 = vld [vmem:[%s905_s1 + $0x28] sm:$0xff] }
  0x12   :  { %144 = vmatpush.msra.mxu0 %v78_v2  ;;  %v68_v9 = vld [vmem:[%s905_s1 + $0x30] sm:$0xff]  ;;  %v69_v10 = vld [vmem:[%s905_s1 + $0x38] sm:$0xff]  ;;  %v70_v11 = vld [vmem:[%s905_s1 + $0x40] sm:$0xff] }
  0x13   :  { %477 = vmatmul.msk.f32.vlgmr.msra.gmra.mxu0 %vm80_vm0, %v62_v3  ;;  %v71_v12 = vld [vmem:[%s905_s1 + $0x48] sm:$0xff]  ;;  %v72_v13 = vld [vmem:[%s905_s1 + $0x50] sm:$0xff]  ;;  %v73_v14 = vld [vmem:[%s905_s1 + $0x58] sm:$0xff] }
  0x14   :  { %v74_v15 = vld [vmem:[%s905_s1 + $0x60] sm:$0xff]  ;;  %v75_v16 = vld [vmem:[%s905_s1 + $0x68] sm:$0xff]  ;;  %v76_v17 = vld [vmem:[%s905_s1 + $0x70] sm:$0xff] }
  0x15   :  { %v77_v18 = vld [vmem:[%s905_s1 + $0x78] sm:$0xff]  ;;  %v194_v35 = vld [vmem:[%s904_s0] sm:$0xff]  ;;  %v195_v36 = vld [vmem:[%s904_s0 + $0x8] sm:$0xff] }
  0x16   :  { %v196_v37 = vld [vmem:[%s904_s0 + $0x10] sm:$0xff]  ;;  %v197_v38 = vld [vmem:[%s904_s0 + $0x18] sm:$0xff]  ;;  %v198_v39 = vld [vmem:[%s904_s0 + $0x20] sm:$0xff] }
  0x17   :  { %v199_v40 = vld [vmem:[%s904_s0 + $0x28] sm:$0xff]  ;;  %v200_v41 = vld [vmem:[%s904_s0 + $0x30] sm:$0xff]  ;;  %v205_v42 = vld [vmem:[%s904_s0 + $0x58] sm:$0xff] }
  0x18   :  { %v201_v43 = vld [vmem:[%s904_s0 + $0x38] sm:$0xff]  ;;  %v206_v44 = vld [vmem:[%s904_s0 + $0x60] sm:$0xff]  ;;  %v207_v46 = vld [vmem:[%s904_s0 + $0x68] sm:$0xff] }
  0x19   :  { %v202_v45 = vld [vmem:[%s904_s0 + $0x40] sm:$0xff]  ;;  %v203_v47 = vld [vmem:[%s904_s0 + $0x48] sm:$0xff]  ;;  %v208_v48 = vld [vmem:[%s904_s0 + $0x70] sm:$0xff] }
  0x1a   :  { %v204_v49 = vld [vmem:[%s904_s0 + $0x50] sm:$0xff]  ;;  %v209_v50 = vld [vmem:[%s904_s0 + $0x78] sm:$0xff]  ;;  %v295_v52 = vld [vmem:[#allocation3] sm:$0xff] }
  0x1b   :  { %478 = vmatmul.msk.f32.gmra.mxu0 %vm80_vm0, %v63_v4  ;;  %v296_v51 = vld [vmem:[#allocation3 + $0x8] sm:$0xff]  ;;  %v858_v53 = vld [vmem:[%s907_s3] ss:$0 sm:$0xff] }
  0x1c   :  { %363 = vmatpush.msra.mxu2 %v296_v51 }
  0x1e   :  { %364 = vmatpush.msra.mxu2 %v295_v52 }
  0x23   :  { %479 = vmatmul.msk.f32.gmra.mxu0 %vm80_vm0, %v64_v5 }
  0x2b   :  { %480 = vmatmul.msk.f32.gmra.mxu0 %vm80_vm0, %v65_v6 }
  0x33   :  { %481 = vmatmul.msk.f32.gmra.mxu0 %vm80_vm0, %v66_v7 }
  0x3b   :  { %482 = vmatmul.msk.f32.gmra.mxu0 %vm80_vm0, %v67_v8 }
  0x43   :  { %483 = vmatmul.msk.f32.gmra.mxu0 %vm80_vm0, %v68_v9 }
  0x4b   :  { %484 = vmatmul.msk.f32.gmra.mxu0 %vm80_vm0, %v69_v10 }
  0x53   :  { %485 = vmatmul.msk.f32.gmra.mxu0 %vm80_vm0, %v70_v11 }
  0x5b   :  { %486 = vmatmul.msk.f32.gmra.mxu0 %vm80_vm0, %v71_v12 }
  0x63   :  { %487 = vmatmul.msk.f32.gmra.mxu0 %vm80_vm0, %v72_v13 }
  0x6b   :  { %488 = vmatmul.msk.f32.gmra.mxu0 %vm80_vm0, %v73_v14 }
  0x73   :  { %489 = vmatmul.msk.f32.gmra.mxu0 %vm80_vm0, %v74_v15 }
  0x7b   :  { %490 = vmatmul.msk.f32.gmra.mxu0 %vm80_vm0, %v75_v16 }
  0x83   :  { %491 = vmatmul.msk.f32.gmra.mxu0 %vm80_vm0, %v76_v17 }
  0x8b   :  { %492 = vmatmul.msk.f32.gmra.mxu0 %vm80_vm0, %v77_v18 }
  0x90   :  { %v146_v19 = vpop.f32.mrf.mxu0 }
  0x98   :  { %v149_v20 = vpop.f32.mrf.mxu0 }
  0xa0   :  { %v152_v21 = vpop.f32.mrf.mxu0 }
  0xa8   :  { %v155_v22 = vpop.f32.mrf.mxu0 }
  0xb0   :  { %v158_v23 = vpop.f32.mrf.mxu0 }
  0xb8   :  { %v161_v24 = vpop.f32.mrf.mxu0 }
  0xc0   :  { %v164_v25 = vpop.f32.mrf.mxu0 }
  0xc8   :  { %v167_v26 = vpop.f32.mrf.mxu0 }
  0xd0   :  { %v170_v27 = vpop.f32.mrf.mxu0 }
  0xd8   :  { %v173_v28 = vpop.f32.mrf.mxu0 }
  0xe0   :  { %v176_v29 = vpop.f32.mrf.mxu0 }
  0xe8   :  { %v179_v30 = vpop.f32.mrf.mxu0 }
  0xf0   :  { %v182_v31 = vpop.f32.mrf.mxu0 }
  0xf8   :  { %v185_v32 = vpop.f32.mrf.mxu0 }
 0x100   :  { %v188_v33 = vpop.f32.mrf.mxu0 }
 0x108   :  { %v191_v34 = vpop.f32.mrf.mxu0 }
 0x109   :  { %214 = vmatpush.msra.mxu1 %v191_v34  ;;  %509 = vmatpush.msra.mxu3 %v191_v34 }
 0x10b   :  { %215 = vmatpush.msra.mxu1 %v188_v33  ;;  %510 = vmatpush.msra.mxu3 %v188_v33 }
 0x10d   :  { %216 = vmatpush.msra.mxu1 %v185_v32  ;;  %511 = vmatpush.msra.mxu3 %v185_v32 }
 0x10f   :  { %217 = vmatpush.msra.mxu1 %v182_v31  ;;  %512 = vmatpush.msra.mxu3 %v182_v31 }
 0x111   :  { %218 = vmatpush.msra.mxu1 %v179_v30  ;;  %513 = vmatpush.msra.mxu3 %v179_v30 }
 0x113   :  { %219 = vmatpush.msra.mxu1 %v176_v29  ;;  %514 = vmatpush.msra.mxu3 %v176_v29 }
 0x115   :  { %220 = vmatpush.msra.mxu1 %v173_v28  ;;  %515 = vmatpush.msra.mxu3 %v173_v28 }
 0x117   :  { %221 = vmatpush.msra.mxu1 %v170_v27  ;;  %516 = vmatpush.msra.mxu3 %v170_v27 }
 0x119   :  { %222 = vmatpush.msra.mxu1 %v167_v26  ;;  %517 = vmatpush.msra.mxu3 %v167_v26 }
 0x11b   :  { %223 = vmatpush.msra.mxu1 %v164_v25  ;;  %518 = vmatpush.msra.mxu3 %v164_v25 }
 0x11d   :  { %224 = vmatpush.msra.mxu1 %v161_v24  ;;  %519 = vmatpush.msra.mxu3 %v161_v24 }
 0x11f   :  { %225 = vmatpush.msra.mxu1 %v158_v23  ;;  %520 = vmatpush.msra.mxu3 %v158_v23 }
 0x121   :  { %226 = vmatpush.msra.mxu1 %v155_v22  ;;  %521 = vmatpush.msra.mxu3 %v155_v22 }
 0x123   :  { %227 = vmatpush.msra.mxu1 %v152_v21  ;;  %522 = vmatpush.msra.mxu3 %v152_v21 }
 0x125   :  { %228 = vmatpush.msra.mxu1 %v149_v20  ;;  %523 = vmatpush.msra.mxu3 %v149_v20 }
 0x127   :  { %229 = vmatpush.msra.mxu1 %v146_v19  ;;  %524 = vmatpush.msra.mxu3 %v146_v19 }
 0x128   :  { %230 = vmatmul.f32.vlgmr.msra.gmra.mxu1 %v194_v35  ;;  %263 = vmatmul.f32.vlgmr.msra.gmra.mxu3 %v205_v42 }
 0x130   :  { %233 = vmatmul.f32.gmra.mxu1 %v195_v36  ;;  %266 = vmatmul.f32.gmra.mxu3 %v206_v44 }
 0x138   :  { %236 = vmatmul.f32.gmra.mxu1 %v196_v37  ;;  %269 = vmatmul.f32.gmra.mxu3 %v207_v46 }
 0x140   :  { %239 = vmatmul.f32.gmra.mxu1 %v197_v38  ;;  %272 = vmatmul.f32.gmra.mxu3 %v208_v48 }
 0x148   :  { %242 = vmatmul.f32.gmra.mxu1 %v198_v39  ;;  %275 = vmatmul.f32.gmra.mxu3 %v209_v50 }
 0x150   :  { %245 = vmatmul.f32.gmra.mxu1 %v199_v40 }
 0x158   :  { %248 = vmatmul.f32.gmra.mxu1 %v200_v41 }
 0x160   :  { %251 = vmatmul.f32.gmra.mxu1 %v201_v43 }
 0x168   :  { %254 = vmatmul.f32.gmra.mxu1 %v202_v45 }
 0x170   :  { %257 = vmatmul.f32.gmra.mxu1 %v203_v47 }
 0x178   :  { %260 = vmatmul.f32.gmra.mxu1 %v204_v49 }
 0x1a5   :  { %v231_v54 = vpop.f32.mrf.mxu1 }
 0x1a6   :  { %v232_v55 = vadd.f32 %v858_v53, %v231_v54 }
 0x1a8   :  { %535 = vtanh.f32 %v232_v55 }
 0x1ab   :  { %v264_v19 = vpop.f32.mrf.mxu3 }
 0x1ac   :  { %v265_v24 = vadd.f32 %v858_v53, %v264_v19 }
 0x1ad   :  { %v234_v56 = vpop.f32.mrf.mxu1 }
 0x1ae   :  { %v536_v57 = vpop.eup %535  ;;  %v235_v58 = vadd.f32 %v858_v53, %v234_v56 }
 0x1af   :  { %493 = vmatmul.msk.f32.vlgmr.msra.gmra.mxu2 %vm80_vm0, %v536_v57 }
 0x1b0   :  { %537 = vtanh.f32 %v235_v58 }
 0x1b3   :  { %v267_v23 = vpop.f32.mrf.mxu3 }
 0x1b4   :  { %v268_v26 = vadd.f32 %v858_v53, %v267_v23 }
 0x1b5   :  { %v237_v59 = vpop.f32.mrf.mxu1 }
 0x1b6   :  { %v538_v60 = vpop.eup %537  ;;  %v238_v61 = vadd.f32 %v858_v53, %v237_v59 }
 0x1b7   :  { %494 = vmatmul.msk.f32.gmra.mxu2 %vm80_vm0, %v538_v60 }
 0x1b8   :  { %539 = vtanh.f32 %v238_v61 }
 0x1bb   :  { %v270_v27 = vpop.f32.mrf.mxu3 }
 0x1bc   :  { %v271_v29 = vadd.f32 %v858_v53, %v270_v27 }
 0x1bd   :  { %v240_v62 = vpop.f32.mrf.mxu1 }
 0x1be   :  { %v540_v63 = vpop.eup %539  ;;  %v241_v0 = vadd.f32 %v858_v53, %v240_v62  ;;  %v534_v62 = vld [vmem:[#allocation2] ss:$0 sm:$0xff] }
 0x1bf   :  { %495 = vmatmul.msk.f32.gmra.mxu2 %vm80_vm0, %v540_v63  ;;  %v681_v63 = vmov 0  }
 0x1c0   :  { %541 = vtanh.f32 %v241_v0  ;;  %531 = vset.pattern.permute.xlu0 %v681_v63 }
 0x1c1   :  { %435 = vperm.xlu0 %531, %v534_v62  }
 0x1c3   :  { %v273_v31 = vpop.f32.mrf.mxu3 }
 0x1c4   :  { %v274_v32 = vadd.f32 %v858_v53, %v273_v31 }
 0x1c5   :  { %v243_v1 = vpop.f32.mrf.mxu1 }
 0x1c6   :  { %v542_v2 = vpop.eup %541  ;;  %v244_v3 = vadd.f32 %v858_v53, %v243_v1 }
 0x1c7   :  { %496 = vmatmul.msk.f32.gmra.mxu2 %vm80_vm0, %v542_v2 }
 0x1c8   :  { %543 = vtanh.f32 %v244_v3 }
 0x1cb   :  { %v276_v34 = vpop.f32.mrf.mxu3 }
 0x1cc   :  { %v277_v35 = vadd.f32 %v858_v53, %v276_v34 }
 0x1cd   :  { %v246_v4 = vpop.f32.mrf.mxu1 }
 0x1ce   :  { %v544_v5 = vpop.eup %543  ;;  %v247_v6 = vadd.f32 %v858_v53, %v246_v4 }
 0x1cf   :  { %497 = vmatmul.msk.f32.gmra.mxu2 %vm80_vm0, %v544_v5 }
 0x1d0   :  { %545 = vtanh.f32 %v247_v6 }
 0x1d5   :  { %v249_v7 = vpop.f32.mrf.mxu1 }
 0x1d6   :  { %v546_v8 = vpop.eup %545  ;;  %v250_v9 = vadd.f32 %v858_v53, %v249_v7 }
 0x1d7   :  { %498 = vmatmul.msk.f32.gmra.mxu2 %vm80_vm0, %v546_v8 }
 0x1d8   :  { %547 = vtanh.f32 %v250_v9 }
 0x1dd   :  { %v252_v10 = vpop.f32.mrf.mxu1 }
 0x1de   :  { %v548_v11 = vpop.eup %547  ;;  %v253_v12 = vadd.f32 %v858_v53, %v252_v10 }
 0x1df   :  { %499 = vmatmul.msk.f32.gmra.mxu2 %vm80_vm0, %v548_v11 }
 0x1e0   :  { %549 = vtanh.f32 %v253_v12 }
 0x1e5   :  { %v255_v13 = vpop.f32.mrf.mxu1 }
 0x1e6   :  { %v550_v14 = vpop.eup %549  ;;  %v256_v15 = vadd.f32 %v858_v53, %v255_v13 }
 0x1e7   :  { %500 = vmatmul.msk.f32.gmra.mxu2 %vm80_vm0, %v550_v14 }
 0x1e8   :  { %551 = vtanh.f32 %v256_v15 }
 0x1ed   :  { %v258_v16 = vpop.f32.mrf.mxu1 }
 0x1ee   :  { %v552_v17 = vpop.eup %551  ;;  %v259_v18 = vadd.f32 %v858_v53, %v258_v16 }
 0x1ef   :  { %501 = vmatmul.msk.f32.gmra.mxu2 %vm80_vm0, %v552_v17 }
 0x1f0   :  { %553 = vtanh.f32 %v259_v18 }
 0x1f5   :  { %v261_v20 = vpop.f32.mrf.mxu1 }
 0x1f6   :  { %v554_v21 = vpop.eup %553  ;;  %v262_v22 = vadd.f32 %v858_v53, %v261_v20  ;;  %v533_v53 = vld [vmem:[%s909_s5] ss:$0 sm:$0xff]  ;;  %s682_s5 = smov [#allocation8]  }
 0x1f7   :  { %502 = vmatmul.msk.f32.gmra.mxu2 %vm80_vm0, %v554_v21  ;;  %s464_s9 = sshll.u32 %s682_s5, 4  ;;  %s465_s9 = int_to_ptr.vmem [resolvable:$true] %s464_s9 }
 0x1f8   :  { %555 = vtanh.f32 %v262_v22 }
 0x1f9   :  { %557 = vtanh.f32 %v265_v24  ;;  %v430_v24 = vld [vmem:[#allocation6] sm:$0xff] }
 0x1fa   :  { %559 = vtanh.f32 %v268_v26 }
 0x1fb   :  { %561 = vtanh.f32 %v271_v29 }
 0x1fc   :  { %563 = vtanh.f32 %v274_v32 }
 0x1fd   :  { %565 = vtanh.f32 %v277_v35 }
 0x1fe   :  { %v556_v25 = vpop.eup %555 }
 0x1ff   :  { %503 = vmatmul.msk.f32.gmra.mxu2 %vm80_vm0, %v556_v25  ;;  %v558_v28 = vpop.eup %557 }
 0x200   :  { %v560_v30 = vpop.eup %559 }
 0x201   :  { %v562_v33 = vpop.eup %561 }
 0x202   :  { %v564_v36 = vpop.eup %563 }
 0x203   :  { %v566_v37 = vpop.eup %565 }
 0x207   :  { %504 = vmatmul.msk.f32.gmra.mxu2 %vm80_vm0, %v558_v28 }
 0x20f   :  { %505 = vmatmul.msk.f32.gmra.mxu2 %vm80_vm0, %v560_v30 }
 0x217   :  { %506 = vmatmul.msk.f32.gmra.mxu2 %vm80_vm0, %v562_v33 }
 0x21f   :  { %507 = vmatmul.msk.f32.gmra.mxu2 %vm80_vm0, %v564_v36 }
 0x227   :  { %508 = vmatmul.msk.f32.gmra.mxu2 %vm80_vm0, %v566_v37 }
 0x232   :  { %v892_v38 = vpop.f32.mrf.mxu2 }
 0x233   :  { %v367_v19 = vadd.f32 %v533_v53, %v892_v38  ;;  %v436_v26 = vpop.permute.xlu0 %435 }
 0x23a   :  { %v894_v39 = vpop.f32.mrf.mxu2 }
 0x23b   :  { %v370_v17 = vadd.f32 %v533_v53, %v894_v39 }
 0x242   :  { %v372_v40 = vpop.f32.mrf.mxu2 }
 0x243   :  { %v373_v15 = vadd.f32 %v533_v53, %v372_v40 }
 0x24a   :  { %v375_v41 = vpop.f32.mrf.mxu2 }
 0x24b   :  { %v376_v13 = vadd.f32 %v533_v53, %v375_v41 }
 0x252   :  { %v378_v42 = vpop.f32.mrf.mxu2 }
 0x253   :  { %v379_v11 = vadd.f32 %v533_v53, %v378_v42 }
 0x25a   :  { %v381_v43 = vpop.f32.mrf.mxu2 }
 0x25b   :  { %v382_v9 = vadd.f32 %v533_v53, %v381_v43 }
 0x262   :  { %v384_v44 = vpop.f32.mrf.mxu2 }
 0x263   :  { %v385_v7 = vadd.f32 %v533_v53, %v384_v44 }
 0x26a   :  { %v387_v45 = vpop.f32.mrf.mxu2 }
 0x26b   :  { %v388_v5 = vadd.f32 %v533_v53, %v387_v45 }
 0x272   :  { %v390_v46 = vpop.f32.mrf.mxu2 }
 0x273   :  { %v391_v3 = vadd.f32 %v533_v53, %v390_v46 }
 0x27a   :  { %v393_v47 = vpop.f32.mrf.mxu2 }
 0x27b   :  { %v394_v1 = vadd.f32 %v533_v53, %v393_v47 }
 0x282   :  { %v396_v48 = vpop.f32.mrf.mxu2 }
 0x283   :  { %v397_v61 = vadd.f32 %v533_v53, %v396_v48 }
 0x28a   :  { %v399_v49 = vpop.f32.mrf.mxu2 }
 0x28b   :  { %v400_v59 = vadd.f32 %v533_v53, %v399_v49 }
 0x292   :  { %v402_v50 = vpop.f32.mrf.mxu2 }
 0x293   :  { %v403_v58 = vadd.f32 %v533_v53, %v402_v50 }
 0x29a   :  { %v405_v51 = vpop.f32.mrf.mxu2 }
 0x29b   :  { %v406_v57 = vadd.f32 %v533_v53, %v405_v51 }
 0x2a2   :  { %v408_v52 = vpop.f32.mrf.mxu2 }
 0x2a3   :  { %v409_v55 = vadd.f32 %v533_v53, %v408_v52 }
 0x2aa   :  { %v411_v54 = vpop.f32.mrf.mxu2 }
 0x2ab   :  { %v412_v56 = vadd.f32 %v533_v53, %v411_v54 }
 0x2ad   :  { %567 = vtanh.f32 %v412_v56 }
 0x2ae   :  { %569 = vtanh.f32 %v409_v55 }
 0x2af   :  { %571 = vtanh.f32 %v406_v57 }
 0x2b0   :  { %573 = vtanh.f32 %v403_v58 }
 0x2b1   :  { %575 = vtanh.f32 %v400_v59 }
 0x2b2   :  { %577 = vtanh.f32 %v397_v61 }
 0x2b3   :  { %v568_v60 = vpop.eup %567  ;;  %579 = vtanh.f32 %v394_v1 }
 0x2b4   :  { %438 = vmatpush.msrb.mxu3 %v568_v60  ;;  %v570_v0 = vpop.eup %569  ;;  %581 = vtanh.f32 %v391_v3 }
 0x2b5   :  { %v572_v2 = vpop.eup %571  ;;  %583 = vtanh.f32 %v388_v5 }
 0x2b6   :  { %439 = vmatpush.msrb.mxu3 %v570_v0  ;;  %v574_v4 = vpop.eup %573  ;;  %585 = vtanh.f32 %v385_v7 }
 0x2b7   :  { %v576_v6 = vpop.eup %575  ;;  %587 = vtanh.f32 %v382_v9 }
 0x2b8   :  { %440 = vmatpush.msrb.mxu3 %v572_v2  ;;  %v578_v8 = vpop.eup %577  ;;  %589 = vtanh.f32 %v379_v11 }
 0x2b9   :  { %v580_v10 = vpop.eup %579  ;;  %591 = vtanh.f32 %v376_v13 }
 0x2ba   :  { %441 = vmatpush.msrb.mxu3 %v574_v4  ;;  %v582_v12 = vpop.eup %581  ;;  %593 = vtanh.f32 %v373_v15 }
 0x2bb   :  { %v584_v14 = vpop.eup %583  ;;  %595 = vtanh.f32 %v370_v17 }
 0x2bc   :  { %442 = vmatpush.msrb.mxu3 %v576_v6  ;;  %v586_v16 = vpop.eup %585  ;;  %597 = vtanh.f32 %v367_v19 }
 0x2bd   :  { %v588_v18 = vpop.eup %587 }
 0x2be   :  { %443 = vmatpush.msrb.mxu3 %v578_v8  ;;  %v590_v20 = vpop.eup %589 }
 0x2bf   :  { %v592_v21 = vpop.eup %591 }
 0x2c0   :  { %444 = vmatpush.msrb.mxu3 %v580_v10  ;;  %v594_v22 = vpop.eup %593 }
 0x2c1   :  { %v596_v23 = vpop.eup %595 }
 0x2c2   :  { %445 = vmatpush.msrb.mxu3 %v582_v12  ;;  %v598_v25 = vpop.eup %597 }
 0x2c4   :  { %446 = vmatpush.msrb.mxu3 %v584_v14 }
 0x2c6   :  { %447 = vmatpush.msrb.mxu3 %v586_v16 }
 0x2c8   :  { %448 = vmatpush.msrb.mxu3 %v588_v18 }
 0x2ca   :  { %449 = vmatpush.msrb.mxu3 %v590_v20 }
 0x2cc   :  { %450 = vmatpush.msrb.mxu3 %v592_v21 }
 0x2ce   :  { %451 = vmatpush.msrb.mxu3 %v594_v22 }
 0x2d0   :  { %452 = vmatpush.msrb.mxu3 %v596_v23 }
 0x2d2   :  { %453 = vmatpush.msrb.mxu3 %v598_v25 }
 0x2d3   :  { %454 = vmatmul.f32.vlgmr.msrb.gmra.mxu3 %v430_v24 }
 0x356   :  { %v455_v27 = vpop.f32.mrf.mxu3 }
 0x357   :  { %v456_v28 = vadd.f32 %v455_v27, %v436_v26 }
 0x359   :  { %458 = vst [vmem:[#allocation8] sm:$0xff] %v456_v28 }
 0x35a   :  { %469 = dma.vmem_to_hbm [thread:$0]  %s465_s9, 128, %s467_s12, [#allocation5]  }
 0x35b   :  { %675 = dma.done.wait [#allocation5], 128  }
 0x35c   :  { %676 = vsyncadd [#allocation5], 4294967168 }
 0x35d   :  { %474 = vsyncpa [#allocation4], 1 }
 0x35e   :  { %475 = vsyncpa [#allocation7], 1 }
 0x35f   :  { %476 = vsyncpa [#allocation5], 1 }

</bundles_post_ra>
